<compile_context>
chip_gen: v6e
topology: v6e:2x2x1
jax: 0.10.0
libtpu: 0.0.40
codegen_flags: <defaults>
</compile_context>

<pallas_src>
import functools

import jax
import jax.numpy as jnp
from jax.experimental import pallas as pl
from jax.experimental.pallas import tpu as pltpu


_NEG_BIG = -1e30  # effective "-inf" for padded lanes; keeps all math finite


def _topk_soft_kernel(x_ref, z_ref, out_ref, *, k: int, t: float):
    # keys = log(x + 1e-30) + gumbel noise
    keys = jnp.log(x_ref[...] + 1e-30) + z_ref[...]
    inv_t = 1.0 / t

    def softmax_step(cur_keys):
        logits = cur_keys * inv_t
        m = jnp.max(logits, axis=-1, keepdims=True)
        e = jnp.exp(logits - m)
        denom = jnp.sum(e, axis=-1, keepdims=True)
        # Exact division (matches jax.nn.softmax).  Do NOT use the approximate
        # EUP reciprocal here: its error is amplified by log(1 - onehot) when
        # onehot is close to 1 and breaks agreement with the reference.
        return e / denom

    # Peeled first iteration: onehot starts at zeros, so khot_mask == 1 and
    # log(khot_mask) == 0 -> first softmax runs directly on keys.
    onehot = softmax_step(keys)
    khot = onehot

    # Remaining k-1 iterations; k is tiny & static, so a plain (unrolled)
    # Python loop keeps the whole chain visible to the scheduler.
    for _ in range(k - 1):
        khot_mask = jnp.maximum(1.0 - onehot, 1e-20)
        keys = keys + jnp.log(khot_mask)
        onehot = softmax_step(keys)
        khot = khot + onehot

    out_ref[...] = khot


def _round_up(a: int, b: int) -> int:
    return ((a + b - 1) // b) * b


def topk_soft(x: jax.Array, z: jax.Array, *, k: int, t: float,
              row_tile: int = 256) -> jax.Array:
    """x, z: (..., D) float32. Returns khot_list of the same shape."""
    assert x.shape == z.shape
    orig_shape = x.shape
    D = orig_shape[-1]
    rows = 1
    for s in orig_shape[:-1]:
        rows *= s
    x2 = x.reshape(rows, D).astype(jnp.float32)
    z2 = z.reshape(rows, D).astype(jnp.float32)

    # ---- pad D to a lane-dense multiple of 128 ---------------------------
    # Padded lanes get keys ~ -1e30 (via the z pad) so they receive ~0
    # softmax mass and never perturb the real lanes.
    Dp = _round_up(D, 128)
    if Dp != D:
        x2 = jnp.pad(x2, ((0, 0), (0, Dp - D)), constant_values=0.0)
        z2 = jnp.pad(z2, ((0, 0), (0, Dp - D)), constant_values=_NEG_BIG)

    # ---- choose the row tile under an explicit VMEM budget ---------------
    # Per grid step: 3 arrays x 2 pipeline buffers + ~6 live f32 temporaries
    # (keys/onehot/khot/logits/e/denom) of shape (tile, Dp).
    vmem_cap = 40 * 1024 * 1024          # safe on v5e/v6e (128 MiB) & v7x (64 MiB)
    bytes_per_row = (3 * 2 + 6) * Dp * 4
    max_rows_by_vmem = max(8, (vmem_cap // bytes_per_row) // 8 * 8)
    tile = min(row_tile, max_rows_by_vmem, _round_up(rows, 8))
    tile = max(8, (tile // 8) * 8)
    # Megacore balance: prefer >= 2 grid steps when there is enough work.
    if tile >= rows and rows >= 16:
        tile = max(8, ((rows // 2) // 8) * 8)

    # ---- pad rows to a multiple of the tile (no divisibility assert) -----
    rows_p = _round_up(rows, tile)
    if rows_p != rows:
        pad_rows = rows_p - rows
        x2 = jnp.pad(x2, ((0, pad_rows), (0, 0)), constant_values=1.0)
        z2 = jnp.pad(z2, ((0, pad_rows), (0, 0)), constant_values=0.0)

    grid = (rows_p // tile,)
    kernel = functools.partial(_topk_soft_kernel, k=k, t=t)

    # Scoped VMEM: enough for the tile working set + margin, capped well under
    # the smallest physical VMEM (v7x: 64 MiB per TC).
    vmem_limit = int(min(vmem_cap, max(8 * 1024 * 1024,
                                       2 * bytes_per_row * tile)))

    out = pl.pallas_call(
        kernel,
        out_shape=jax.ShapeDtypeStruct((rows_p, Dp), jnp.float32),
        grid_spec=pltpu.PrefetchScalarGridSpec(
            num_scalar_prefetch=0,
            grid=grid,
            in_specs=[
                pl.BlockSpec((tile, Dp), lambda i: (i, 0)),
                pl.BlockSpec((tile, Dp), lambda i: (i, 0)),
            ],
            out_specs=pl.BlockSpec((tile, Dp), lambda i: (i, 0)),
        ),
        compiler_params=pltpu.CompilerParams(
            dimension_semantics=("parallel",),
            vmem_limit_bytes=vmem_limit),
    )(x2, z2)

    out = out[:rows, :D]
    return out.reshape(orig_shape)


def _topk_soft_ref(x, z, k, t):
    """Pure-JAX reference matching the PyTorch module (given the same noise)."""
    keys = jnp.log(x + 1e-30) + z
    onehot = jnp.zeros_like(x)
    khot = jnp.zeros_like(x)
    for _ in range(k):
        mask = jnp.maximum(1.0 - onehot, 1e-20)
        keys = keys + jnp.log(mask)
        onehot = jax.nn.softmax(keys / t, axis=-1)
        khot = khot + onehot
    return khot


if __name__ == "__main__":
    K = 3
    T = 0.5

    key = jax.random.PRNGKey(0)

    # --- case 1: lane-aligned D -------------------------------------------
    B, S, D = 2, 8, 128
    kx, kz, key = jax.random.split(key, 3)
    x = jax.random.uniform(kx, (B, S, D), dtype=jnp.float32,
                           minval=0.0, maxval=1.0)
    z = jax.random.gumbel(kz, (B, S, D), dtype=jnp.float32)

    out = topk_soft(x, z, k=K, t=T)
    out = jax.block_until_ready(out)

    ref = _topk_soft_ref(x, z, K, T)
    assert out.shape == (B, S, D)
    assert bool(jnp.all(jnp.isfinite(out)))
    assert bool(jnp.allclose(jnp.sum(out, axis=-1), K, atol=1e-2))
    assert bool(jnp.allclose(out, ref, atol=5e-3, rtol=1e-2))

    # --- case 2: non-aligned D and row count (exercises padding path) -----
    B2, S2, D2 = 3, 5, 100
    kx2, kz2, key = jax.random.split(key, 3)
    x2 = jax.random.uniform(kx2, (B2, S2, D2), dtype=jnp.float32,
                            minval=0.0, maxval=1.0)
    z2 = jax.random.gumbel(kz2, (B2, S2, D2), dtype=jnp.float32)

    out2 = topk_soft(x2, z2, k=K, t=T)
    out2 = jax.block_until_ready(out2)

    ref2 = _topk_soft_ref(x2, z2, K, T)
    assert out2.shape == (B2, S2, D2)
    assert bool(jnp.all(jnp.isfinite(out2)))
    assert bool(jnp.allclose(jnp.sum(out2, axis=-1), K, atol=1e-2))
    assert bool(jnp.allclose(out2, ref2, atol=5e-3, rtol=1e-2))

    print("KERNEL_OK")
</pallas_src>

<mosaic_0001>
module attributes {stable_mosaic.version = 11 : i64} {
  func.func @_topk_soft_kernel(%arg0: i32, %arg1: memref<8x128xf32, #tpu.memory_space<vmem>>, %arg2: memref<8x128xf32, #tpu.memory_space<vmem>>, %arg3: memref<8x128xf32, #tpu.memory_space<vmem>>) attributes {dimension_semantics = [#tpu.dimension_semantics<parallel>], iteration_bounds = array<i64: 2>, scalar_prefetch = 0 : i64, scratch_operands = 0 : i64, tpu.core_type = #tpu.core_type<tc>, window_params = [{transform_indices = @transform_0, window_bounds = array<i64: 8, 128>}, {transform_indices = @transform_1, window_bounds = array<i64: 8, 128>}, {transform_indices = @transform_2, window_bounds = array<i64: 8, 128>}]} {
    %c0 = arith.constant 0 : index
    %c0_0 = arith.constant 0 : index
    %0 = vector.load %arg1[%c0, %c0_0] : memref<8x128xf32, #tpu.memory_space<vmem>>, vector<8x128xf32>
    %cst = arith.constant 1.000000e-30 : f32
    %1 = vector.broadcast %cst : f32 to vector<8x128xf32>
    %2 = arith.addf %0, %1 : vector<8x128xf32>
    %3 = math.log %2 : vector<8x128xf32>
    %c0_1 = arith.constant 0 : index
    %c0_2 = arith.constant 0 : index
    %4 = vector.load %arg2[%c0_1, %c0_2] : memref<8x128xf32, #tpu.memory_space<vmem>>, vector<8x128xf32>
    %5 = arith.addf %3, %4 : vector<8x128xf32>
    %cst_3 = arith.constant 2.000000e+00 : f32
    %6 = vector.broadcast %cst_3 : f32 to vector<8x128xf32>
    %7 = arith.mulf %5, %6 : vector<8x128xf32>
    %cst_4 = arith.constant dense<0xFF800000> : vector<8xf32>
    %8 = vector.multi_reduction <maximumf>, %7, %cst_4 [1] : vector<8x128xf32> to vector<8xf32>
    %9 = vector.shape_cast %8 : vector<8xf32> to vector<8x1xf32>
    %10 = vector.broadcast %9 : vector<8x1xf32> to vector<8x128xf32>
    %11 = arith.subf %7, %10 : vector<8x128xf32>
    %12 = math.exp %11 : vector<8x128xf32>
    %cst_5 = arith.constant dense<0.000000e+00> : vector<8xf32>
    %13 = vector.multi_reduction <add>, %12, %cst_5 [1] : vector<8x128xf32> to vector<8xf32>
    %14 = vector.shape_cast %13 : vector<8xf32> to vector<8x1xf32>
    %15 = vector.broadcast %14 : vector<8x1xf32> to vector<8x128xf32>
    %16 = arith.divf %12, %15 : vector<8x128xf32>
    %cst_6 = arith.constant 1.000000e+00 : f32
    %17 = vector.broadcast %cst_6 : f32 to vector<8x128xf32>
    %18 = arith.subf %17, %16 : vector<8x128xf32>
    %cst_7 = arith.constant 9.99999968E-21 : f32
    %19 = vector.broadcast %cst_7 : f32 to vector<8x128xf32>
    %20 = arith.maximumf %18, %19 : vector<8x128xf32>
    %21 = math.log %20 : vector<8x128xf32>
    %22 = arith.addf %5, %21 : vector<8x128xf32>
    %cst_8 = arith.constant 2.000000e+00 : f32
    %23 = vector.broadcast %cst_8 : f32 to vector<8x128xf32>
    %24 = arith.mulf %22, %23 : vector<8x128xf32>
    %cst_9 = arith.constant dense<0xFF800000> : vector<8xf32>
    %25 = vector.multi_reduction <maximumf>, %24, %cst_9 [1] : vector<8x128xf32> to vector<8xf32>
    %26 = vector.shape_cast %25 : vector<8xf32> to vector<8x1xf32>
    %27 = vector.broadcast %26 : vector<8x1xf32> to vector<8x128xf32>
    %28 = arith.subf %24, %27 : vector<8x128xf32>
    %29 = math.exp %28 : vector<8x128xf32>
    %cst_10 = arith.constant dense<0.000000e+00> : vector<8xf32>
    %30 = vector.multi_reduction <add>, %29, %cst_10 [1] : vector<8x128xf32> to vector<8xf32>
    %31 = vector.shape_cast %30 : vector<8xf32> to vector<8x1xf32>
    %32 = vector.broadcast %31 : vector<8x1xf32> to vector<8x128xf32>
    %33 = arith.divf %29, %32 : vector<8x128xf32>
    %34 = arith.addf %16, %33 : vector<8x128xf32>
    %cst_11 = arith.constant 1.000000e+00 : f32
    %35 = vector.broadcast %cst_11 : f32 to vector<8x128xf32>
    %36 = arith.subf %35, %33 : vector<8x128xf32>
    %cst_12 = arith.constant 9.99999968E-21 : f32
    %37 = vector.broadcast %cst_12 : f32 to vector<8x128xf32>
    %38 = arith.maximumf %36, %37 : vector<8x128xf32>
    %39 = math.log %38 : vector<8x128xf32>
    %40 = arith.addf %22, %39 : vector<8x128xf32>
    %cst_13 = arith.constant 2.000000e+00 : f32
    %41 = vector.broadcast %cst_13 : f32 to vector<8x128xf32>
    %42 = arith.mulf %40, %41 : vector<8x128xf32>
    %cst_14 = arith.constant dense<0xFF800000> : vector<8xf32>
    %43 = vector.multi_reduction <maximumf>, %42, %cst_14 [1] : vector<8x128xf32> to vector<8xf32>
    %44 = vector.shape_cast %43 : vector<8xf32> to vector<8x1xf32>
    %45 = vector.broadcast %44 : vector<8x1xf32> to vector<8x128xf32>
    %46 = arith.subf %42, %45 : vector<8x128xf32>
    %47 = math.exp %46 : vector<8x128xf32>
    %cst_15 = arith.constant dense<0.000000e+00> : vector<8xf32>
    %48 = vector.multi_reduction <add>, %47, %cst_15 [1] : vector<8x128xf32> to vector<8xf32>
    %49 = vector.shape_cast %48 : vector<8xf32> to vector<8x1xf32>
    %50 = vector.broadcast %49 : vector<8x1xf32> to vector<8x128xf32>
    %51 = arith.divf %47, %50 : vector<8x128xf32>
    %52 = arith.addf %34, %51 : vector<8x128xf32>
    %c0_16 = arith.constant 0 : index
    %c0_17 = arith.constant 0 : index
    %53 = vector.load %arg3[%c0_16, %c0_17] : memref<8x128xf32, #tpu.memory_space<vmem>>, vector<8x128xf32>
    tpu.vector_store %arg3[%c0_16, %c0_17], %52 {strides = array<i32>} : memref<8x128xf32, #tpu.memory_space<vmem>>, vector<8x128xf32>,
    return
  }
  func.func @transform_0(%arg0: i32) -> (i32, i32) {
    %c0_i32 = arith.constant 0 : i32
    %c0_i32_0 = arith.constant 0 : i32
    return %arg0, %c0_i32 : i32, i32
  }
  func.func @transform_1(%arg0: i32) -> (i32, i32) {
    %c0_i32 = arith.constant 0 : i32
    %c0_i32_0 = arith.constant 0 : i32
    return %arg0, %c0_i32 : i32, i32
  }
  func.func @transform_2(%arg0: i32) -> (i32, i32) {
    %c0_i32 = arith.constant 0 : i32
    %c0_i32_0 = arith.constant 0 : i32
    return %arg0, %c0_i32 : i32, i32
  }
}

</mosaic_0001>

<bundles_post_ra>
// kernel: tpu_custom_call.1
= control target key start
LH: loop header
LB: loop body
LE: loop exit
PB: predicated region body
PF: predicated region fallthrough
CT: control target
= control target key end

     0   :  { %7 = vsyncpa [#allocation3], 0  ;;  %s779_s0 = inlined_call_operand.hbm [shape: f32[16,128], index: 0, kind: input, shape index: {}]   ;;  %s780_s1 = inlined_call_operand.hbm [shape: f32[16,128], index: 1, kind: input, shape index: {}]   ;;  %s781_s2 = inlined_call_operand.hbm [shape: f32[16,128], index: 2, kind: output, shape index: {}]  }
   0x1   :  { %9 = vsyncpa [#allocation3 + $0x1], 0 }
   0x2   :  { %10 = vsyncpa [#allocation6], 0 }
   0x3   :  { %12 = vsyncpa [#allocation6 + $0x1], 0 }
   0x4   :  { %13 = vsyncpa [#allocation4], 0 }
   0x5   :  { %15 = vsyncpa [#allocation4 + $0x1], 0  ;;  %s580_s9 = smov 0   ;;  %s582_s10 = smov 0  }
   0x6   :  { %s584_s11 = smov 0   ;;  %s586_s12 = smov 0  }
   0x7 LB: > { %s601_s13 = sadd.s32 4294967295, %s560_s12   ;;  %s352_s14 = sadd.s32 4294967294, %s560_s12   ;;  %s560_s12 = sphi %s586_s12, %s800_s12   ;;  %s556_s11 = sphi %s584_s11, %s799_s11   ;;  %s552_s10 = sphi %s582_s10, %s798_s10   ;;  %s548_s9 = sphi %s580_s9, %s797_s9  }
   0x8   : > { %s605_s15 = sadd.s32 1, %s560_s12   ;;  %s28_s16 = sadd.s32 1, %s556_s11 }
   0x9   : > { %s25_s17 = ssub.s32 %s560_s12, %s605_s15  ;;  %p35_p0 = scmp.ne.s32.totalorder %s556_s11, %s552_s10 }
   0xa   : > { %p26_p1 = scmp.eq.s32.totalorder %s25_s17, 0  ;;  %p36_p2 = scmp.eq.s32.totalorder %s560_s12, 0 }
   0xb   : > { %p41_p3 = scmp.ne.s32.totalorder %s552_s10, %s548_s9  ;;  %p42_p4 = scmp.eq.s32.totalorder %s601_s13, 0 }
   0xc   : > { %s617_s18 = scalar_select %p26_p1, %s556_s11, %s28_s16  }
   0xd   : > { %p619_p5 = por %p36_p2, %p35_p0  ;;  %p623_p6 = por %p42_p4, %p41_p3 }
   0xe   : > { %p91_p7 = scmp.eq.s32.totalorder %s601_s13, 1  ;;  %p97_p8 = scmp.eq.s32.totalorder %s352_s14, 1 }
   0xf   : > { %s785_s20 = scalar_select %p623_p6, 1, 0 }
  0x10   : > { %p384_p10 = scmp.lt.s32.totalorder %s560_s12, 2  ;;  %p630_p11 = por %p91_p7, %p35_p0 }
  0x11   : > { %p634_p12 = por %p97_p8, %p41_p3  ;;  %s639_s23 = sand.u32 1, %s556_s11  }
  0x12   : > { %s786_s21 = scalar_select %p630_p11, 1, 0 }
  0x13   : > { %s787_s22 = scalar_select %p634_p12, 1, 0 }
  0x14   : > { %s356_s24 = sshll.u32 %s560_s12, 7  ;;  %s355_s25 = sshll.u32 %s639_s23, 3 }
  0x15   : > { %s648_s28 = scalar_lea.hbm %s779_s0, %s356_s24  ;;  %s121_s29 = scalar_lea.vmem [#allocation2], %s355_s25 }
  0x16   : > { %s128_s30 = sshll.u32 %s121_s29, 4  ;;  %p654_p13 = pnand %p384_p10, %p619_p5  ;;  %s658_s30 = int_to_ptr.vmem [resolvable:$true] %s128_s30 }
  0x17   : > { %s118_s4 = scalar_lea.sflag [#allocation3], %s639_s23  ;;  %s436_s5 = scalar_lea.hbm %s648_s28, 128 }
  0x18   : > { %p437_p2 = scmp.ne.s32.totalorder %s648_s28, %s436_s5  ;;  %p438_p3 = pneg %p654_p13 }
  0x19   : > { %s441_s8 = scalar_lea.hbm %s779_s0, 256  ;;  %p442_p5 = scmp.lt.s32.totalorder %s648_s28, %s779_s0 }
  0x1a   : > { %p439_p4 = pnand %p438_p3, %p437_p2  ;;  %p443_p8 = scmp.lt.s32.totalorder %s441_s8, %s436_s5 }
  0x1c   : > { %p440_p7 = pneg %p439_p4  ;;  %p444_p10 = por %p443_p8, %p442_p5 }
  0x1e   : > { %p445_p9 = pnand %p444_p10, %p440_p7 }
  0x20   : > { %448 = shalt.err (!%p445_p9)
}
  0x21   : > { %s449_s17 = scalar_lea.vmem %s658_s30, 128  ;;  %s562_s19 = smov [#allocation2]  }
  0x22   : > { %p450_p0 = scmp.ne.s32.totalorder %s658_s30, %s449_s17  ;;  %s454_s26 = sshll.u32 %s562_s19, 4  ;;  %s455_s26 = int_to_ptr.vmem [resolvable:$false] %s454_s26 }
  0x23   : > { %s456_s27 = scalar_lea.vmem %s455_s26, 256  ;;  %p457_p1 = scmp.lt.s32.totalorder %s658_s30, %s455_s26 }
  0x24   : > { %p452_p2 = pnand %p450_p0, %p438_p3  ;;  %p458_p12 = scmp.lt.s32.totalorder %s456_s27, %s449_s17 }
  0x26   : > { %p453_p4 = pneg %p452_p2  ;;  %p459_p11 = por %p458_p12, %p457_p1 }
  0x28   : > { %p460_p5 = pnand %p459_p11, %p453_p4 }
  0x2a   : > { %463 = shalt.err (!%p460_p5)
}
  0x2b   : > { %376 = dma.hbm_to_vmem [thread:$0]  (!%p654_p13), %s648_s28, 128, %s658_s30, %s118_s4  }
  0x2c   : > { %p789_p9 = scmp.lt.s32.totalorder %s560_s12, 3  ;;  %p790_p0 = scmp.ge.s32.totalorder %s560_s12, 1 }
  0x2d   : > { %s700_s7 = scalar_lea.hbm %s780_s1, %s356_s24  ;;  %s139_s8 = scalar_lea.vmem [#allocation5], %s355_s25 }
  0x2e   : > { %p691_p7 = pnand %p790_p0, %p789_p9  ;;  %s146_s14 = sshll.u32 %s139_s8, 4  ;;  %s147_s14 = int_to_ptr.vmem [resolvable:$true] %s146_s14 }
  0x2f   : > { %s136_s28 = scalar_lea.sflag [#allocation6], %s639_s23  ;;  %s464_s30 = scalar_lea.hbm %s700_s7, 128 }
  0x30   : > { %s791_s29 = scalar_select %p691_p7, 1, 0 }
  0x31   : > { %p465_p11 = scmp.ne.s32.totalorder %s700_s7, %s464_s30  ;;  %s469_s17 = scalar_lea.hbm %s780_s1, 256 }
  0x32   : > { %p470_p8 = scmp.lt.s32.totalorder %s700_s7, %s780_s1  ;;  %p471_p10 = scmp.lt.s32.totalorder %s469_s17, %s464_s30 }
  0x33   : > { %p467_p12 = pnand %p465_p11, %p438_p3 }
  0x34   : > { %p472_p2 = por %p471_p10, %p470_p8 }
  0x35   : > { %p468_p1 = pneg %p467_p12 }
  0x37   : > { %p473_p4 = pnand %p472_p2, %p468_p1 }
  0x39   : > { %476 = shalt.err (!%p473_p4)
}
  0x3a   : > { %s477_s25 = scalar_lea.vmem %s147_s14, 128  ;;  %s563_s23 = smov [#allocation5]  }
  0x3b   : > { %p478_p5 = scmp.ne.s32.totalorder %s147_s14, %s477_s25  ;;  %s482_s26 = sshll.u32 %s563_s23, 4  ;;  %s483_s26 = int_to_ptr.vmem [resolvable:$false] %s482_s26 }
  0x3c   : > { %s484_s27 = scalar_lea.vmem %s483_s26, 256  ;;  %p485_p11 = scmp.lt.s32.totalorder %s147_s14, %s483_s26 }
  0x3d   : > { %p480_p9 = pnand %p478_p5, %p438_p3  ;;  %p486_p12 = scmp.lt.s32.totalorder %s484_s27, %s477_s25 }
  0x3f   : > { %p481_p0 = pneg %p480_p9  ;;  %p487_p6 = por %p486_p12, %p485_p11 }
  0x41   : > { %p488_p7 = pnand %p487_p6, %p481_p0 }
  0x43   : > { %491 = shalt.err (!%p488_p7)
}
  0x44   : > { %379 = dma.hbm_to_vmem [thread:$0]  (!%p654_p13), %s700_s7, 128, %s147_s14, %s136_s28  }
  0x45   : > { %p792_p1 = scmp.ne.s32.totalorder %s791_s29, 0 }
  0x46   : > { %s726_s5 = sand.u32 (!%p792_p1), 1, %s552_s10   ;;  %p793_p6 = scmp.ne.s32.totalorder (!%p792_p1), %s785_s20, 0 }
  0x47   : > { %155 = sbr.rel (%p792_p1) target bundleno = 1095 (0x447), region = 28  ;;  %s729_s6 = sshll.u32 (!%p792_p1), %s726_s5, 3 }
  0x48   : > { %s158_s8 = scalar_lea.sflag (!%p792_p1), [#allocation3], %s726_s5  ;;  %s161_s30 = scalar_lea.vmem (!%p792_p1), [#allocation2], %s729_s6 }
  0x4c   : > { %535 = dma.done.wait (%p793_p6), %s158_s8, 128  }
  0x4d   : > { %537 = vsyncadd (%p793_p6), %s158_s8, 4294967168  ;;  %s167_s3 = scalar_lea.sflag [#allocation6], %s726_s5  ;;  %s170_s29 = scalar_lea.vmem [#allocation5], %s729_s6 }
  0x4e   : > { %539 = dma.done.wait (%p793_p6), %s167_s3, 128  }
  0x4f   : > { %541 = vsyncadd (%p793_p6), %s167_s3, 4294967168  ;;  %v196_v0 = vld [vmem:[%s161_s30] sm:$0xff]  ;;  %v200_v3 = vld [vmem:[%s170_s29] sm:$0xff]  ;;  %s364_s20 = sshll.u32 %s601_s13, 7  ;;  %s195_s7 = scalar_lea.vmem [#allocation7], %s729_s6 }
  0x50   : > { %v197_v1 = vadd.f32 1e-30, %v196_v0  ;;  %s259_s14 = sshll.u32 %s195_s7, 4  ;;  %s257_s16 = scalar_lea.hbm %s781_s2, %s364_s20  ;;  %s260_s14 = int_to_ptr.vmem [resolvable:$true] %s259_s14 }
  0x51   : > { %s246_s17 = scalar_lea.sflag [#allocation4], %s726_s5  ;;  %s492_s24 = scalar_lea.vmem %s260_s14, 128 }
  0x52   : > { %418 = vlog2.f32 %v197_v1  ;;  %p493_p13 = scmp.ne.s32.totalorder %s260_s14, %s492_s24  ;;  %p794_p3 = scmp.ne.s32.totalorder %s786_s21, 0 }
  0x53   : > { %s564_s19 = smov [#allocation7]  }
  0x54   : > { %p494_p7 = pnand %p493_p13, %p794_p3  ;;  %s496_s25 = sshll.u32 %s564_s19, 4  ;;  %s497_s25 = int_to_ptr.vmem [resolvable:$false] %s496_s25 }
  0x55   : > { %s498_s13 = scalar_lea.vmem %s497_s25, 256  ;;  %p499_p10 = scmp.lt.s32.totalorder %s260_s14, %s497_s25 }
  0x56   : > { %p495_p8 = pneg %p494_p7  ;;  %p500_p2 = scmp.lt.s32.totalorder %s498_s13, %s492_s24 }
  0x58   : > { %p501_p4 = por %p500_p2, %p499_p10 }
  0x5a   : > { %p502_p5 = pnand %p501_p4, %p495_p8 }
  0x5f   : > { %v419_v2 = vpop.eup %418 }
  0x60   : > { %v199_v4 = vmul.f32 0.6931472, %v419_v2 }
  0x62   : > { %v201_v5 = vadd.f32 %v200_v3, %v199_v4 }
  0x64   : > { %v202_v6 = vmul.f32 2.0, %v201_v5 }
  0x66   : > { %203 = vmax.xlane.f32.xlu0 %v202_v6 }
  0xef   : > { %v204_v7 = vpop.xlane.xlu0 %203 }
  0xf0   : > { %v205_v8 = vsub.f32 %v202_v6, %v204_v7 }
  0xf2   : > { %v206_v9 = vmul.f32 1.442695, %v205_v8 }
  0xf4   : > { %420 = vpow2.f32 %v206_v9 }
 0x101   : > { %v421_v10 = vpop.eup %420 }
 0x102   : > { %208 = vadd.xlane.f32.xlu0 %v421_v10 }
 0x18b   : > { %v209_v11 = vpop.xlane.xlu0 %208 }
 0x18c   : > { %422 = vrcp.f32 %v209_v11 }
 0x199   : > { %v423_v12 = vpop.eup %422 }
 0x19a   : > { %v211_v13 = vmul.f32 %v423_v12, %v421_v10 }
 0x19c   : > { %v212_v14 = vsub.f32 1.0, %v211_v13 }
 0x19e   : > { %v213_v15 = vmax.f32 %v212_v14, 1e-20 }
 0x1a0   : > { %424 = vlog2.f32 %v213_v15 }
 0x1ad   : > { %v425_v16 = vpop.eup %424 }
 0x1ae   : > { %v215_v17 = vmul.f32 0.6931472, %v425_v16 }
 0x1b0   : > { %v216_v18 = vadd.f32 %v215_v17, %v201_v5 }
 0x1b2   : > { %v217_v19 = vmul.f32 2.0, %v216_v18 }
 0x1b4   : > { %218 = vmax.xlane.f32.xlu1 %v217_v19 }
 0x23d   : > { %v219_v20 = vpop.xlane.xlu1 %218 }
 0x23e   : > { %v220_v21 = vsub.f32 %v217_v19, %v219_v20 }
 0x240   : > { %v221_v22 = vmul.f32 1.442695, %v220_v21 }
 0x242   : > { %426 = vpow2.f32 %v221_v22 }
 0x24f   : > { %v427_v23 = vpop.eup %426 }
 0x250   : > { %223 = vadd.xlane.f32.xlu1 %v427_v23 }
 0x2d9   : > { %v224_v24 = vpop.xlane.xlu1 %223 }
 0x2da   : > { %428 = vrcp.f32 %v224_v24 }
 0x2e7   : > { %v429_v25 = vpop.eup %428 }
 0x2e8   : > { %v226_v26 = vmul.f32 %v429_v25, %v427_v23 }
 0x2ea   : > { %v228_v27 = vsub.f32 1.0, %v226_v26  ;;  %v227_v39 = vadd.f32 %v226_v26, %v211_v13 }
 0x2ec   : > { %v229_v28 = vmax.f32 %v228_v27, 1e-20 }
 0x2ee   : > { %430 = vlog2.f32 %v229_v28 }
 0x2fb   : > { %v431_v29 = vpop.eup %430 }
 0x2fc   : > { %v231_v30 = vmul.f32 0.6931472, %v431_v29 }
 0x2fe   : > { %v232_v31 = vadd.f32 %v231_v30, %v216_v18 }
 0x300   : > { %v233_v32 = vmul.f32 2.0, %v232_v31 }
 0x302   : > { %234 = vmax.xlane.f32.xlu0 %v233_v32 }
 0x38b   : > { %v235_v33 = vpop.xlane.xlu0 %234 }
 0x38c   : > { %v236_v34 = vsub.f32 %v233_v32, %v235_v33 }
 0x38e   : > { %v237_v35 = vmul.f32 1.442695, %v236_v34 }
 0x390   : > { %432 = vpow2.f32 %v237_v35 }
 0x39d   : > { %v433_v36 = vpop.eup %432 }
 0x39e   : > { %239 = vadd.xlane.f32.xlu1 %v433_v36 }
 0x427   : > { %v240_v37 = vpop.xlane.xlu1 %239 }
 0x428   : > { %434 = vrcp.f32 %v240_v37 }
 0x435   : > { %v435_v38 = vpop.eup %434 }
 0x436   : > { %v242_v40 = vmul.f32 %v435_v38, %v433_v36 }
 0x438   : > { %v243_v41 = vadd.f32 %v242_v40, %v227_v39 }
 0x43a   : > { %244 = vst [vmem:[%s195_s7] sm:$0xff] %v243_v41 }
 0x43b   : > { %505 = shalt.err (!%p502_p5)
}
 0x43c   : > { %s506_s23 = scalar_lea.hbm %s257_s16, 128  ;;  %s510_s5 = scalar_lea.hbm %s781_s2, 256 }
 0x43d   : > { %p507_p9 = scmp.ne.s32.totalorder %s257_s16, %s506_s23  ;;  %p511_p12 = scmp.lt.s32.totalorder %s257_s16, %s781_s2 }
 0x43e   : > { %p512_p1 = scmp.lt.s32.totalorder %s510_s5, %s506_s23 }
 0x43f   : > { %p508_p0 = pnand %p507_p9, %p794_p3 }
 0x440   : > { %p513_p6 = por %p512_p1, %p511_p12 }
 0x441   : > { %p509_p11 = pneg %p508_p0 }
 0x443   : > { %p514_p13 = pnand %p513_p6, %p509_p11 }
 0x445   : > { %517 = shalt.err (!%p514_p13)
}
 0x446   : > { %371 = dma.vmem_to_hbm [thread:$0]  (%p794_p3), %s260_s14, 128, %s257_s16, %s246_s17  }
 0x447 PF: > { %s271_s30 = sand.u32 1, %s548_s9   ;;  %p795_p7 = scmp.ne.s32.totalorder %s787_s22, 0 }
 0x448   : > { %p796_p8 = scmp.ge.s32.totalorder %s560_s12, 2  ;;  %s272_s3 = scalar_lea.sflag [#allocation4], %s271_s30 }
 0x44a   : > { %p381_p10 = pnand %p796_p8, %p795_p7 }
 0x44c   : > { %p382_p2 = pneg %p381_p10 }
 0x44e   : > { %543 = dma.done.wait (%p382_p2), %s272_s3, 128  }
 0x44f   : > { %545 = vsyncadd (%p382_p2), %s272_s3, 4294967168  ;;  %p18_p4 = scmp.ge.s32.totalorder %s605_s15, 4   ;;  %s797_s9 = smov %s552_s10 }
 0x450   : > { %s798_s10 = smov %s556_s11  ;;  %s799_s11 = smov %s617_s18 }
 0x451   : > { %s800_s12 = smov %s605_s15  ;;  %20 = sbr.rel (!%p18_p4) target bundleno = 7 (0x7), region = 86 }
 0x456   :  { %277 = vsyncpa [#allocation3], 1 }
 0x457   :  { %279 = vsyncpa [#allocation3 + $0x1], 1 }
 0x458   :  { %280 = vsyncpa [#allocation6], 1 }
 0x459   :  { %282 = vsyncpa [#allocation6 + $0x1], 1 }
 0x45a   :  { %283 = vsyncpa [#allocation4], 1 }
 0x45b   :  { %285 = vsyncpa [#allocation4 + $0x1], 1 }

</bundles_post_ra>
